<compile_context>
chip_gen: v7x
topology: tpu7x:2x2x1
jax: 0.10.0
libtpu: 0.0.40
codegen_flags: <defaults>
</compile_context>

<pallas_src>
import jax
import jax.numpy as jnp
from jax.experimental import pallas as pl
from jax.experimental.pallas import tpu as pltpu

NEG_SLOPE = 0.01   # LeakyReLU negative slope
LANE = 128         # lane width: feature dims padded to multiples of this
SUBLANE = 16       # bf16 sublane packing: batch tile rounded to this


def _leaky_relu(v):
    return jnp.where(v >= 0, v, NEG_SLOPE * v)


def _round_up(v, m):
    return ((v + m - 1) // m) * m


def resblock_kernel(x_ref, w1_ref, b1_ref, w2_ref, b2_ref, o_ref):
    x = x_ref[...]                                            # (TN, Dp) f32
    # linear1: bf16 MXU inputs, f32 accumulation; bias + LeakyReLU in f32
    h = jnp.dot(x.astype(jnp.bfloat16), w1_ref[...],
                preferred_element_type=jnp.float32)
    h = _leaky_relu(h + b1_ref[...])                          # (TN, Hp) f32
    # linear2
    y = jnp.dot(h.astype(jnp.bfloat16), w2_ref[...],
                preferred_element_type=jnp.float32)
    y = _leaky_relu(y + b2_ref[...])                          # (TN, Dp) f32
    # residual add in f32
    o_ref[...] = (x + y).astype(o_ref.dtype)


def _vmem_capacity_bytes():
    try:
        cap = getattr(pltpu.get_tpu_info(), "vmem_capacity_bytes", None)
        if cap:
            return int(cap)
    except Exception:
        pass
    return 64 << 20   # conservative fallback (v7x per-core VMEM)


def _vmem_needed(tn, dp, hp, param_buffers):
    tile = 4 * tn * dp                                   # f32 x tile (== out tile)
    params = 2 * (dp * hp + hp * dp) + 4 * (hp + dp)     # bf16 weights + f32 biases
    inter = (4 + 2) * tn * hp + 4 * tn * dp              # h f32 + h bf16 + y f32
    return 2 * (2 * tile) + param_buffers * params + inter + (2 << 20)


def _build_resblock_call(n, dp, hp, tn, vmem_limit, single_buffer_params):
    def resident(shape):
        # Constant index_map -> grid-resident; single-buffer when supported.
        kwargs = {}
        if single_buffer_params:
            kwargs["pipeline_mode"] = pl.Buffered(1)
        return pl.BlockSpec(shape, lambda i: (0, 0), **kwargs)

    cost = pl.CostEstimate(
        flops=4 * n * dp * hp,                                  # two matmuls
        transcendentals=0,
        bytes_accessed=2 * 4 * n * dp + 4 * dp * hp + 4 * (hp + dp),
    )
    return pl.pallas_call(
        resblock_kernel,
        out_shape=jax.ShapeDtypeStruct((n, dp), jnp.float32),
        grid_spec=pltpu.PrefetchScalarGridSpec(
            num_scalar_prefetch=0,
            grid=(pl.cdiv(n, tn),),
            in_specs=[
                pl.BlockSpec((tn, dp), lambda i: (i, 0)),       # x tile
                resident((dp, hp)),                             # W1 (bf16, resident)
                resident((1, hp)),                              # b1 (f32)
                resident((hp, dp)),                             # W2 (bf16, resident)
                resident((1, dp)),                              # b2 (f32)
            ],
            out_specs=pl.BlockSpec((tn, dp), lambda i: (i, 0)),
        ),
        compiler_params=pltpu.CompilerParams(
            dimension_semantics=("parallel",),                  # independent batch tiles
            vmem_limit_bytes=vmem_limit,
        ),
        cost_estimate=cost,
    )


def resblock_forward(x, w1, b1, w2, b2, *, block_n=1024):
    """Fused ResBlock forward.

    x : (N, D_in) f32
    w1: (D_in, H)  (== torch linear1.weight.T)   b1: (H,)
    w2: (H, D_in)  (== torch linear2.weight.T)   b2: (D_in,)
    returns (N, D_in) f32
    """
    N, D_in = x.shape
    H = w1.shape[1]
    assert w1.shape == (D_in, H) and w2.shape == (H, D_in)
    assert b1.shape == (H,) and b2.shape == (D_in,)

    # Lane-dense feature dims: zero-pad D_in / H to multiples of 128.  Zero
    # padding is exact: padded columns of h are leaky_relu(0)=0 and contribute
    # nothing to the second matmul; padded output columns are sliced off.
    Dp, Hp = _round_up(D_in, LANE), _round_up(H, LANE)
    x_p = jnp.pad(x.astype(jnp.float32), ((0, 0), (0, Dp - D_in)))
    w1_p = jnp.pad(w1, ((0, Dp - D_in), (0, Hp - H))).astype(jnp.bfloat16)
    w2_p = jnp.pad(w2, ((0, Hp - H), (0, Dp - D_in))).astype(jnp.bfloat16)
    b1_p = jnp.pad(b1.astype(jnp.float32), (0, Hp - H)).reshape(1, Hp)
    b2_p = jnp.pad(b2.astype(jnp.float32), (0, Dp - D_in)).reshape(1, Dp)

    # Batch tile: as big as the VMEM budget allows, multiple of 16 (bf16
    # sublane packing), and >= 2 grid steps when N allows so the "parallel"
    # axis can shard across both TensorCores on v7x.
    tn = min(block_n, N)
    if tn == N and N >= 2 * SUBLANE:
        tn = _round_up((N + 1) // 2, SUBLANE)
    if tn != N:
        tn = max(SUBLANE, _round_up(tn, SUBLANE))
    tn = min(tn, _round_up(N, SUBLANE))

    cap_budget = int(_vmem_capacity_bytes() * 0.8)
    while tn > SUBLANE and _vmem_needed(tn, Dp, Hp, 1) > cap_budget:
        tn = max(SUBLANE, _round_up(tn // 2, SUBLANE))
    # TODO(synk): if the weights alone exceed the VMEM budget (very large
    # D_in*H), stream the hidden dim (pltpu.emit_pipeline over W1 column /
    # W2 row blocks with an f32 accumulator) instead of full weight residency.

    def run(single_buffer_params):
        vmem_limit = int(min(
            max(_vmem_needed(tn, Dp, Hp, 1 if single_buffer_params else 2),
                8 << 20),
            cap_budget))
        call = _build_resblock_call(N, Dp, Hp, tn, vmem_limit,
                                    single_buffer_params)
        return call(x_p, w1_p, b1_p, w2_p, b2_p)

    try:
        out_p = run(True)
    except Exception:
        # Single-buffered params (pl.Buffered(1)) unavailable on this version:
        # fall back to default double-buffered resident params.
        out_p = run(False)

    return out_p[:, :D_in]


def reference_bf16(x, w1, b1, w2, b2):
    """Pure-JAX reference with the same bf16-input / f32-accum matmul numerics."""
    h = jnp.dot(x.astype(jnp.bfloat16), w1.astype(jnp.bfloat16),
                preferred_element_type=jnp.float32) + b1
    h = _leaky_relu(h)
    y = jnp.dot(h.astype(jnp.bfloat16), w2.astype(jnp.bfloat16),
                preferred_element_type=jnp.float32) + b2
    y = _leaky_relu(y)
    return x + y


if __name__ == "__main__":
    key = jax.random.PRNGKey(0)
    k1, k2, k3, k4 = jax.random.split(key, 4)

    # Small shapes consistent with the module: batch=16, in_features=32, hidden=64.
    N, D_IN, HID = 16, 32, 64
    x = jax.random.normal(k1, (N, D_IN), dtype=jnp.float32)

    # linear1: kaiming-normal fan_in init (a=0.01 leaky_relu gain), zero bias.
    gain = (2.0 / (1.0 + NEG_SLOPE ** 2)) ** 0.5
    w1 = jax.random.normal(k2, (D_IN, HID), jnp.float32) * (gain / (D_IN ** 0.5))
    b1 = jnp.zeros((HID,), jnp.float32)

    # linear2: NONZERO random params here so both matmuls are exercised
    # (the module's zero-init identity case is checked separately below).
    w2 = jax.random.normal(k3, (HID, D_IN), jnp.float32) * 0.05
    b2 = jax.random.normal(k4, (D_IN,), jnp.float32) * 0.05

    out = jax.block_until_ready(resblock_forward(x, w1, b1, w2, b2))
    ref = reference_bf16(x, w1, b1, w2, b2)
    assert out.shape == (N, D_IN) and out.dtype == jnp.float32
    assert jnp.allclose(out, ref, atol=1e-4, rtol=1e-4), "mismatch vs reference"

    # Module-init sanity check: zero linear2 => ResBlock is the identity.
    out0 = jax.block_until_ready(
        resblock_forward(x, w1, b1, jnp.zeros_like(w2), jnp.zeros_like(b2)))
    assert jnp.allclose(out0, x, atol=1e-6), "zero-init residual should be identity"

    print("KERNEL_OK")
</pallas_src>

<mosaic_0001>
module attributes {stable_mosaic.version = 11 : i64} {
  func.func @resblock_kernel(%arg0: i32, %arg1: memref<16x128xf32, #tpu.memory_space<vmem>>, %arg2: memref<128x128xbf16, #tpu.memory_space<vmem>>, %arg3: memref<1x128xf32, #tpu.memory_space<vmem>>, %arg4: memref<128x128xbf16, #tpu.memory_space<vmem>>, %arg5: memref<1x128xf32, #tpu.memory_space<vmem>>, %arg6: memref<16x128xf32, #tpu.memory_space<vmem>>) attributes {dimension_semantics = [#tpu.dimension_semantics<parallel>], iteration_bounds = array<i64: 1>, scalar_prefetch = 0 : i64, scratch_operands = 0 : i64, tpu.core_type = #tpu.core_type<tc>, window_params = [{transform_indices = @transform_0, window_bounds = array<i64: 16, 128>}, {pipeline_mode = #tpu.pipeline_mode<synchronous>, transform_indices = @transform_1, window_bounds = array<i64: 128, 128>}, {pipeline_mode = #tpu.pipeline_mode<synchronous>, transform_indices = @transform_2, window_bounds = array<i64: 1, 128>}, {pipeline_mode = #tpu.pipeline_mode<synchronous>, transform_indices = @transform_3, window_bounds = array<i64: 128, 128>}, {pipeline_mode = #tpu.pipeline_mode<synchronous>, transform_indices = @transform_4, window_bounds = array<i64: 1, 128>}, {transform_indices = @transform_5, window_bounds = array<i64: 16, 128>}]} {
    %c0 = arith.constant 0 : index
    %c0_0 = arith.constant 0 : index
    %0 = vector.load %arg1[%c0, %c0_0] : memref<16x128xf32, #tpu.memory_space<vmem>>, vector<16x128xf32>
    %1 = arith.truncf %0 : vector<16x128xf32> to vector<16x128xbf16>
    %c0_1 = arith.constant 0 : index
    %c0_2 = arith.constant 0 : index
    %2 = vector.load %arg2[%c0_1, %c0_2] : memref<128x128xbf16, #tpu.memory_space<vmem>>, vector<128x128xbf16>
    %cst = arith.constant dense<0.000000e+00> : vector<16x128xf32>
    %3 = tpu.matmul %1, %2, %cst {dimension_numbers = #tpu.dot_dimension_numbers<[1], [0], [0], [1], [0, 0, 1, 1], [], []>} : vector<16x128xbf16>, vector<128x128xbf16>, vector<16x128xf32> -> vector<16x128xf32>
    %c0_3 = arith.constant 0 : index
    %c0_4 = arith.constant 0 : index
    %4 = vector.load %arg3[%c0_3, %c0_4] : memref<1x128xf32, #tpu.memory_space<vmem>>, vector<1x128xf32>
    %5 = vector.broadcast %4 : vector<1x128xf32> to vector<16x128xf32>
    %6 = arith.addf %3, %5 : vector<16x128xf32>
    %cst_5 = arith.constant 0.000000e+00 : f32
    %7 = vector.broadcast %cst_5 : f32 to vector<16x128xf32>
    %8 = arith.cmpf oge, %6, %7 : vector<16x128xf32>
    %cst_6 = arith.constant 0.00999999977 : f32
    %9 = vector.broadcast %cst_6 : f32 to vector<16x128xf32>
    %10 = arith.mulf %9, %6 : vector<16x128xf32>
    %11 = arith.select %8, %6, %10 : vector<16x128xi1>, vector<16x128xf32>
    %12 = arith.truncf %11 : vector<16x128xf32> to vector<16x128xbf16>
    %c0_7 = arith.constant 0 : index
    %c0_8 = arith.constant 0 : index
    %13 = vector.load %arg4[%c0_7, %c0_8] : memref<128x128xbf16, #tpu.memory_space<vmem>>, vector<128x128xbf16>
    %cst_9 = arith.constant dense<0.000000e+00> : vector<16x128xf32>
    %14 = tpu.matmul %12, %13, %cst_9 {dimension_numbers = #tpu.dot_dimension_numbers<[1], [0], [0], [1], [0, 0, 1, 1], [], []>} : vector<16x128xbf16>, vector<128x128xbf16>, vector<16x128xf32> -> vector<16x128xf32>
    %c0_10 = arith.constant 0 : index
    %c0_11 = arith.constant 0 : index
    %15 = vector.load %arg5[%c0_10, %c0_11] : memref<1x128xf32, #tpu.memory_space<vmem>>, vector<1x128xf32>
    %16 = vector.broadcast %15 : vector<1x128xf32> to vector<16x128xf32>
    %17 = arith.addf %14, %16 : vector<16x128xf32>
    %cst_12 = arith.constant 0.000000e+00 : f32
    %18 = vector.broadcast %cst_12 : f32 to vector<16x128xf32>
    %19 = arith.cmpf oge, %17, %18 : vector<16x128xf32>
    %cst_13 = arith.constant 0.00999999977 : f32
    %20 = vector.broadcast %cst_13 : f32 to vector<16x128xf32>
    %21 = arith.mulf %20, %17 : vector<16x128xf32>
    %22 = arith.select %19, %17, %21 : vector<16x128xi1>, vector<16x128xf32>
    %23 = arith.addf %0, %22 : vector<16x128xf32>
    %c0_14 = arith.constant 0 : index
    %c0_15 = arith.constant 0 : index
    %24 = vector.load %arg6[%c0_14, %c0_15] : memref<16x128xf32, #tpu.memory_space<vmem>>, vector<16x128xf32>
    tpu.vector_store %arg6[%c0_14, %c0_15], %23 {strides = array<i32>} : memref<16x128xf32, #tpu.memory_space<vmem>>, vector<16x128xf32>,
    return
  }
  func.func @transform_0(%arg0: i32) -> (i32, i32) {
    %c0_i32 = arith.constant 0 : i32
    %c0_i32_0 = arith.constant 0 : i32
    return %arg0, %c0_i32 : i32, i32
  }
  func.func @transform_1(%arg0: i32) -> (i32, i32) {
    %c0_i32 = arith.constant 0 : i32
    %c0_i32_0 = arith.constant 0 : i32
    %c0_i32_1 = arith.constant 0 : i32
    return %c0_i32, %c0_i32_0 : i32, i32
  }
  func.func @transform_2(%arg0: i32) -> (i32, i32) {
    %c0_i32 = arith.constant 0 : i32
    %c0_i32_0 = arith.constant 0 : i32
    %c0_i32_1 = arith.constant 0 : i32
    return %c0_i32, %c0_i32_0 : i32, i32
  }
  func.func @transform_3(%arg0: i32) -> (i32, i32) {
    %c0_i32 = arith.constant 0 : i32
    %c0_i32_0 = arith.constant 0 : i32
    %c0_i32_1 = arith.constant 0 : i32
    return %c0_i32, %c0_i32_0 : i32, i32
  }
  func.func @transform_4(%arg0: i32) -> (i32, i32) {
    %c0_i32 = arith.constant 0 : i32
    %c0_i32_0 = arith.constant 0 : i32
    %c0_i32_1 = arith.constant 0 : i32
    return %c0_i32, %c0_i32_0 : i32, i32
  }
  func.func @transform_5(%arg0: i32) -> (i32, i32) {
    %c0_i32 = arith.constant 0 : i32
    %c0_i32_0 = arith.constant 0 : i32
    return %arg0, %c0_i32 : i32, i32
  }
}

module attributes {stable_mosaic.version = 11 : i64} {
  func.func @resblock_kernel(%arg0: i32, %arg1: memref<16x128xf32, #tpu.memory_space<vmem>>, %arg2: memref<128x128xbf16, #tpu.memory_space<vmem>>, %arg3: memref<1x128xf32, #tpu.memory_space<vmem>>, %arg4: memref<128x128xbf16, #tpu.memory_space<vmem>>, %arg5: memref<1x128xf32, #tpu.memory_space<vmem>>, %arg6: memref<16x128xf32, #tpu.memory_space<vmem>>) attributes {dimension_semantics = [#tpu.dimension_semantics<parallel>], iteration_bounds = array<i64: 1>, scalar_prefetch = 0 : i64, scratch_operands = 0 : i64, tpu.core_type = #tpu.core_type<tc>, window_params = [{transform_indices = @transform_0, window_bounds = array<i64: 16, 128>}, {pipeline_mode = #tpu.pipeline_mode<synchronous>, transform_indices = @transform_1, window_bounds = array<i64: 128, 128>}, {pipeline_mode = #tpu.pipeline_mode<synchronous>, transform_indices = @transform_2, window_bounds = array<i64: 1, 128>}, {pipeline_mode = #tpu.pipeline_mode<synchronous>, transform_indices = @transform_3, window_bounds = array<i64: 128, 128>}, {pipeline_mode = #tpu.pipeline_mode<synchronous>, transform_indices = @transform_4, window_bounds = array<i64: 1, 128>}, {transform_indices = @transform_5, window_bounds = array<i64: 16, 128>}]} {
    %c0 = arith.constant 0 : index
    %c0_0 = arith.constant 0 : index
    %0 = vector.load %arg1[%c0, %c0_0] : memref<16x128xf32, #tpu.memory_space<vmem>>, vector<16x128xf32>
    %1 = arith.truncf %0 : vector<16x128xf32> to vector<16x128xbf16>
    %c0_1 = arith.constant 0 : index
    %c0_2 = arith.constant 0 : index
    %2 = vector.load %arg2[%c0_1, %c0_2] : memref<128x128xbf16, #tpu.memory_space<vmem>>, vector<128x128xbf16>
    %cst = arith.constant dense<0.000000e+00> : vector<16x128xf32>
    %3 = tpu.matmul %1, %2, %cst {dimension_numbers = #tpu.dot_dimension_numbers<[1], [0], [0], [1], [0, 0, 1, 1], [], []>} : vector<16x128xbf16>, vector<128x128xbf16>, vector<16x128xf32> -> vector<16x128xf32>
    %c0_3 = arith.constant 0 : index
    %c0_4 = arith.constant 0 : index
    %4 = vector.load %arg3[%c0_3, %c0_4] : memref<1x128xf32, #tpu.memory_space<vmem>>, vector<1x128xf32>
    %5 = vector.broadcast %4 : vector<1x128xf32> to vector<16x128xf32>
    %6 = arith.addf %3, %5 : vector<16x128xf32>
    %cst_5 = arith.constant 0.000000e+00 : f32
    %7 = vector.broadcast %cst_5 : f32 to vector<16x128xf32>
    %8 = arith.cmpf oge, %6, %7 : vector<16x128xf32>
    %cst_6 = arith.constant 0.00999999977 : f32
    %9 = vector.broadcast %cst_6 : f32 to vector<16x128xf32>
    %10 = arith.mulf %9, %6 : vector<16x128xf32>
    %11 = arith.select %8, %6, %10 : vector<16x128xi1>, vector<16x128xf32>
    %12 = arith.truncf %11 : vector<16x128xf32> to vector<16x128xbf16>
    %c0_7 = arith.constant 0 : index
    %c0_8 = arith.constant 0 : index
    %13 = vector.load %arg4[%c0_7, %c0_8] : memref<128x128xbf16, #tpu.memory_space<vmem>>, vector<128x128xbf16>
    %cst_9 = arith.constant dense<0.000000e+00> : vector<16x128xf32>
    %14 = tpu.matmul %12, %13, %cst_9 {dimension_numbers = #tpu.dot_dimension_numbers<[1], [0], [0], [1], [0, 0, 1, 1], [], []>} : vector<16x128xbf16>, vector<128x128xbf16>, vector<16x128xf32> -> vector<16x128xf32>
    %c0_10 = arith.constant 0 : index
    %c0_11 = arith.constant 0 : index
    %15 = vector.load %arg5[%c0_10, %c0_11] : memref<1x128xf32, #tpu.memory_space<vmem>>, vector<1x128xf32>
    %16 = vector.broadcast %15 : vector<1x128xf32> to vector<16x128xf32>
    %17 = arith.addf %14, %16 : vector<16x128xf32>
    %cst_12 = arith.constant 0.000000e+00 : f32
    %18 = vector.broadcast %cst_12 : f32 to vector<16x128xf32>
    %19 = arith.cmpf oge, %17, %18 : vector<16x128xf32>
    %cst_13 = arith.constant 0.00999999977 : f32
    %20 = vector.broadcast %cst_13 : f32 to vector<16x128xf32>
    %21 = arith.mulf %20, %17 : vector<16x128xf32>
    %22 = arith.select %19, %17, %21 : vector<16x128xi1>, vector<16x128xf32>
    %23 = arith.addf %0, %22 : vector<16x128xf32>
    %c0_14 = arith.constant 0 : index
    %c0_15 = arith.constant 0 : index
    %24 = vector.load %arg6[%c0_14, %c0_15] : memref<16x128xf32, #tpu.memory_space<vmem>>, vector<16x128xf32>
    tpu.vector_store %arg6[%c0_14, %c0_15], %23 {strides = array<i32>} : memref<16x128xf32, #tpu.memory_space<vmem>>, vector<16x128xf32>,
    return
  }
  func.func @transform_0(%arg0: i32) -> (i32, i32) {
    %c0_i32 = arith.constant 0 : i32
    %c0_i32_0 = arith.constant 0 : i32
    return %arg0, %c0_i32 : i32, i32
  }
  func.func @transform_1(%arg0: i32) -> (i32, i32) {
    %c0_i32 = arith.constant 0 : i32
    %c0_i32_0 = arith.constant 0 : i32
    %c0_i32_1 = arith.constant 0 : i32
    return %c0_i32, %c0_i32_0 : i32, i32
  }
  func.func @transform_2(%arg0: i32) -> (i32, i32) {
    %c0_i32 = arith.constant 0 : i32
    %c0_i32_0 = arith.constant 0 : i32
    %c0_i32_1 = arith.constant 0 : i32
    return %c0_i32, %c0_i32_0 : i32, i32
  }
  func.func @transform_3(%arg0: i32) -> (i32, i32) {
    %c0_i32 = arith.constant 0 : i32
    %c0_i32_0 = arith.constant 0 : i32
    %c0_i32_1 = arith.constant 0 : i32
    return %c0_i32, %c0_i32_0 : i32, i32
  }
  func.func @transform_4(%arg0: i32) -> (i32, i32) {
    %c0_i32 = arith.constant 0 : i32
    %c0_i32_0 = arith.constant 0 : i32
    %c0_i32_1 = arith.constant 0 : i32
    return %c0_i32, %c0_i32_0 : i32, i32
  }
  func.func @transform_5(%arg0: i32) -> (i32, i32) {
    %c0_i32 = arith.constant 0 : i32
    %c0_i32_0 = arith.constant 0 : i32
    return %arg0, %c0_i32 : i32, i32
  }
}

</mosaic_0001>

<bundles_post_ra>
// kernel: tpu_custom_call.1
= control target key start
LH: loop header
LB: loop body
LE: loop exit
PB: predicated region body
PF: predicated region fallthrough
CT: control target
= control target key end

     0   :  { %10 = vsyncpa [#allocation3], 0  ;;  %s627_s0 = inlined_call_operand.hbm [shape: f32[16,128], index: 0, kind: input, shape index: {}]   ;;  %s628_s1 = inlined_call_operand.hbm [shape: bf16[128,128], index: 1, kind: input, shape index: {}]   ;;  %s629_s2 = inlined_call_operand.vmem [shape: f32[1,128], index: 2, kind: input, shape index: {}]   ;;  %s630_s3 = inlined_call_operand.hbm [shape: bf16[128,128], index: 3, kind: input, shape index: {}]   ;;  %s631_s4 = inlined_call_operand.vmem [shape: f32[1,128], index: 4, kind: input, shape index: {}]   ;;  %s632_s5 = inlined_call_operand.hbm [shape: f32[16,128], index: 5, kind: output, shape index: {}]  }
   0x1   :  { %11 = vsyncpa [#allocation6], 0 }
   0x2   :  { %12 = vsyncpa [#allocation4], 0  ;;  %s521_s18 = smov [#allocation5]   ;;  %s427_s22 = scalar_lea.hbm %s628_s1, 1024 }
   0x3   :  { %s30_s19 = sshll.u32 %s521_s18, 4  ;;  %p428_p0 = scmp.ne.s32.totalorder %s628_s1, %s427_s22  ;;  %s31_s19 = int_to_ptr.vmem [resolvable:$true] %s30_s19 }
   0x4   :  { %p431_p1 = scmp.lt.u32.totalorder %s427_s22, %s628_s1 }
   0x6   :  { %p433_p2 = pnand %p431_p1, %p428_p0 }
   0x8   :  { %436 = shalt.err (!%p433_p2)
}
   0x9   :  { %s437_s27 = scalar_lea.vmem %s31_s19, 1024  ;;  %p442_p4 = scmp.lt.s32.totalorder %s31_s19, %s31_s19 }
   0xa   :  { %p438_p3 = scmp.ne.s32.totalorder %s31_s19, %s437_s27  ;;  %p443_p5 = scmp.lt.s32.totalorder %s437_s27, %s437_s27 }
   0xc   :  { %p444_p6 = por %p443_p5, %p442_p4 }
   0xe   :  { %p445_p7 = pnand %p444_p6, %p438_p3 }
  0x10   :  { %448 = shalt.err (!%p445_p7)
}
  0x11   :  { %s522_s28 = smov 64   ;;  %s523_s29 = smov 4  }
  0x12   :  { %36 = dma.hbm_to_vmem [thread:$0]  %s628_s1, 1024, %s31_s19, [#allocation6], %s522_s28, %s522_s28, %s523_s29  }
  0x13   :  { %s524_s7 = smov [#allocation2]   ;;  %s449_s11 = scalar_lea.hbm %s627_s0, 256 }
  0x14   :  { %s18_s8 = sshll.u32 %s524_s7, 4  ;;  %p450_p8 = scmp.ne.s32.totalorder %s627_s0, %s449_s11  ;;  %s19_s8 = int_to_ptr.vmem [resolvable:$true] %s18_s8 }
  0x15   :  { %p453_p9 = scmp.lt.u32.totalorder %s449_s11, %s627_s0 }
  0x17   :  { %p455_p10 = pnand %p453_p9, %p450_p8 }
  0x19   :  { %458 = shalt.err (!%p455_p10)
}
  0x1a   :  { %s459_s16 = scalar_lea.vmem %s19_s8, 256  ;;  %p464_p12 = scmp.lt.s32.totalorder %s19_s8, %s19_s8 }
  0x1b   :  { %p460_p11 = scmp.ne.s32.totalorder %s19_s8, %s459_s16  ;;  %p465_p13 = scmp.lt.s32.totalorder %s459_s16, %s459_s16 }
  0x1d   :  { %p466_p0 = por %p465_p13, %p464_p12 }
  0x1f   :  { %p467_p1 = pnand %p466_p0, %p460_p11 }
  0x21   :  { %470 = shalt.err (!%p467_p1)
}
  0x22   :  { %s525_s1 = smov 128   ;;  %s526_s17 = smov 8  }
  0x23   :  { %24 = dma.hbm_to_vmem [thread:$0]  %s627_s0, 256, %s19_s8, [#allocation3], %s525_s1, %s525_s1, %s526_s17  }
  0x24   :  { %s527_s20 = smov [#allocation7]   ;;  %s471_s24 = scalar_lea.hbm %s630_s3, 1024 }
  0x25   :  { %s44_s21 = sshll.u32 %s527_s20, 4  ;;  %p472_p2 = scmp.ne.s32.totalorder %s630_s3, %s471_s24  ;;  %s45_s21 = int_to_ptr.vmem [resolvable:$true] %s44_s21 }
  0x26   :  { %p475_p3 = scmp.lt.u32.totalorder %s471_s24, %s630_s3 }
  0x28   :  { %p477_p4 = pnand %p475_p3, %p472_p2 }
  0x2a   :  { %480 = shalt.err (!%p477_p4)
}
  0x2b   :  { %s481_s6 = scalar_lea.vmem %s45_s21, 1024  ;;  %p486_p6 = scmp.lt.s32.totalorder %s45_s21, %s45_s21 }
  0x2c   :  { %p482_p5 = scmp.ne.s32.totalorder %s45_s21, %s481_s6  ;;  %p487_p7 = scmp.lt.s32.totalorder %s481_s6, %s481_s6 }
  0x2e   :  { %p488_p8 = por %p487_p7, %p486_p6 }
  0x30   :  { %p489_p9 = pnand %p488_p8, %p482_p5 }
  0x32   :  { %492 = shalt.err (!%p489_p9)
}
  0x33   :  { %50 = dma.hbm_to_vmem [thread:$0]  %s630_s3, 1024, %s45_s21, [#allocation6], %s522_s28, %s522_s28, %s523_s29  }
  0x34   :  { %515 = dma.done.wait [#allocation3], 256  }
  0x35   :  { %516 = vsyncadd [#allocation3], 4294967040 }
  0x36   :  { %517 = dma.done.wait [#allocation6], 2048  }
  0x37   :  { %518 = vsyncadd [#allocation6], 4294965248  ;;  %v528_v0 = vmov 0.0   ;;  %vm529_vm0 = vmmov 0   ;;  %v411_v1 = vld [vmem:[#allocation5] sm:$0xff]   ;;  %v412_v2 = vld [vmem:[#allocation5 + $0x8] sm:$0xff]  }
  0x38   :  { %361 = vmatprep.subr.bf16.mxu0 %v528_v0  ;;  %377 = vmatprep.mubr.msk.bf16.mxu0 %vm529_vm0, %v528_v0  ;;  %v413_v3 = vld [vmem:[#allocation5 + $0x10] sm:$0xff]   ;;  %v419_v4 = vld [vmem:[#allocation7] sm:$0xff]   ;;  %v414_v5 = vld [vmem:[#allocation5 + $0x18] sm:$0xff]  }
  0x39   :  { %381 = vmatprep.subr.bf16.mxu1 %v528_v0  ;;  %397 = vmatprep.mubr.msk.bf16.mxu1 %vm529_vm0, %v528_v0  ;;  %v420_v6 = vld [vmem:[#allocation7 + $0x8] sm:$0xff]   ;;  %v415_v7 = vld [vmem:[#allocation5 + $0x20] sm:$0xff]   ;;  %v421_v8 = vld [vmem:[#allocation7 + $0x10] sm:$0xff]  }
  0x3a   :  { %362 = vmatpush3.bf16.msra.mxu0 %v411_v1  ;;  %382 = vmatpush3.bf16.msra.mxu1 %v419_v4  ;;  %v416_v9 = vld [vmem:[#allocation5 + $0x28] sm:$0xff]   ;;  %v422_v10 = vld [vmem:[#allocation7 + $0x18] sm:$0xff]   ;;  %v417_v11 = vld [vmem:[#allocation5 + $0x30] sm:$0xff]  }
  0x3b   :  { %363 = vmatprep.subr.bf16.mxu0 %v528_v0  ;;  %383 = vmatprep.subr.bf16.mxu1 %v528_v0  ;;  %v423_v12 = vld [vmem:[#allocation7 + $0x20] sm:$0xff]   ;;  %v418_v13 = vld [vmem:[#allocation5 + $0x38] sm:$0xff]   ;;  %v63_v14 = vld [vmem:[#allocation2] sm:$0xff] }
  0x3c   :  { %v64_v15 = vld [vmem:[#allocation2 + $0x8] sm:$0xff]  ;;  %v424_v16 = vld [vmem:[#allocation7 + $0x28] sm:$0xff]   ;;  %v425_v18 = vld [vmem:[#allocation7 + $0x30] sm:$0xff]  }
  0x3d   :  { %v65_v17 = vpack.c.bf16 %v64_v15, %v63_v14  ;;  %v426_v19 = vld [vmem:[#allocation7 + $0x38] sm:$0xff]   ;;  %v325_v20 = vld [vmem:[%s629_s2] ss:$0 sm:$0xff]  ;;  %s530_s2 = smov [#allocation8]  }
  0x3e   :  { %364 = vmatpush3.bf16.msra.mxu0 %v412_v2  ;;  %384 = vmatpush3.bf16.msra.mxu1 %v420_v6  ;;  %v334_v32 = vld [vmem:[%s631_s4] ss:$0 sm:$0xff]  ;;  %s312_s9 = sshll.u32 %s530_s2, 4  ;;  %s313_s9 = int_to_ptr.vmem [resolvable:$true] %s312_s9 }
  0x3f   :  { %365 = vmatprep.subr.bf16.mxu0 %v528_v0  ;;  %385 = vmatprep.subr.bf16.mxu1 %v528_v0  ;;  %s493_s4 = scalar_lea.vmem %s313_s9, 256  ;;  %p498_p11 = scmp.lt.s32.totalorder %s313_s9, %s313_s9 }
  0x40   :  { %p494_p10 = scmp.ne.s32.totalorder %s313_s9, %s493_s4  ;;  %p499_p12 = scmp.lt.s32.totalorder %s493_s4, %s493_s4 }
  0x42   :  { %366 = vmatpush3.bf16.msra.mxu0 %v413_v3  ;;  %386 = vmatpush3.bf16.msra.mxu1 %v421_v8  ;;  %p500_p13 = por %p499_p12, %p498_p11 }
  0x43   :  { %367 = vmatprep.subr.bf16.mxu0 %v528_v0  ;;  %387 = vmatprep.subr.bf16.mxu1 %v528_v0 }
  0x44   :  { %p501_p0 = pnand %p500_p13, %p494_p10 }
  0x46   :  { %368 = vmatpush3.bf16.msra.mxu0 %v414_v5  ;;  %388 = vmatpush3.bf16.msra.mxu1 %v422_v10 }
  0x47   :  { %369 = vmatprep.subr.bf16.mxu0 %v528_v0  ;;  %389 = vmatprep.subr.bf16.mxu1 %v528_v0 }
  0x4a   :  { %370 = vmatpush3.bf16.msra.mxu0 %v415_v7  ;;  %390 = vmatpush3.bf16.msra.mxu1 %v423_v12 }
  0x4b   :  { %371 = vmatprep.subr.bf16.mxu0 %v528_v0  ;;  %391 = vmatprep.subr.bf16.mxu1 %v528_v0 }
  0x4e   :  { %372 = vmatpush3.bf16.msra.mxu0 %v416_v9  ;;  %392 = vmatpush3.bf16.msra.mxu1 %v424_v16 }
  0x4f   :  { %373 = vmatprep.subr.bf16.mxu0 %v528_v0  ;;  %393 = vmatprep.subr.bf16.mxu1 %v528_v0 }
  0x52   :  { %374 = vmatpush3.bf16.msra.mxu0 %v417_v11  ;;  %394 = vmatpush3.bf16.msra.mxu1 %v425_v18 }
  0x53   :  { %375 = vmatprep.subr.bf16.mxu0 %v528_v0  ;;  %395 = vmatprep.subr.bf16.mxu1 %v528_v0 }
  0x56   :  { %376 = vmatpush3.bf16.msra.mxu0 %v418_v13  ;;  %396 = vmatpush3.bf16.msra.mxu1 %v426_v19 }
  0x59   :  { %378 = vmatmul.mubr.bf16.vlgmr.msra.gmra.mrb[0].mxu0 %v65_v17 }
 0x12c   :  { %v171_v21 = vpop.f32.mrb[0].mxu0 }
 0x12d   :  { %v172_v22 = vadd.f32 %v325_v20, %v171_v21  ;;  %v379_v23 = vpop.f32.mrb[1].mxu0 }
 0x12e   :  { %v174_v24 = vpop.f32.mrb[2].mxu0 }
 0x12f   :  { %v180_v25 = vmul.f32 0.01, %v172_v22  ;;  %v175_v26 = vadd.f32 %v325_v20, %v174_v24  ;;  %v380_v27 = vpop.f32.mrb[3].mxu0  ;;  %vm178_vm1 = vcmp.ge.f32.partialorder %v172_v22, 0.0 }
 0x131   :  { %vm179_vm2 = vcmp.ge.f32.partialorder %v175_v26, 0.0  ;;  %v181_v28 = vmul.f32 0.01, %v175_v26  ;;  %v182_v29 = vsel %vm178_vm1, %v172_v22, %v180_v25 }
 0x133   :  { %v183_v30 = vsel %vm179_vm2, %v175_v26, %v181_v28 }
 0x134   :  { %v184_v31 = vpack.c.bf16 %v183_v30, %v182_v29 }
 0x136   :  { %398 = vmatmul.mubr.bf16.vlgmr.msra.gmra.mrb[0].mxu1 %v184_v31 }
 0x209   :  { %v290_v33 = vpop.f32.mrb[0].mxu1 }
 0x20a   :  { %v291_v34 = vadd.f32 %v334_v32, %v290_v33  ;;  %v399_v35 = vpop.f32.mrb[1].mxu1 }
 0x20b   :  { %v293_v36 = vpop.f32.mrb[2].mxu1 }
 0x20c   :  { %vm297_vm3 = vcmp.ge.f32.partialorder %v291_v34, 0.0  ;;  %v299_v37 = vmul.f32 0.01, %v291_v34  ;;  %v294_v38 = vadd.f32 %v334_v32, %v293_v36  ;;  %v400_v39 = vpop.f32.mrb[3].mxu1 }
 0x20e   :  { %v301_v40 = vsel %vm297_vm3, %v291_v34, %v299_v37  ;;  %vm298_vm4 = vcmp.ge.f32.partialorder %v294_v38, 0.0  ;;  %v300_v41 = vmul.f32 0.01, %v294_v38 }
 0x20f   :  { %v303_v42 = vadd.f32 %v301_v40, %v63_v14 }
 0x210   :  { %v302_v43 = vsel %vm298_vm4, %v294_v38, %v300_v41 }
 0x211   :  { %v304_v44 = vadd.f32 %v302_v43, %v64_v15  ;;  %305 = vst [vmem:[#allocation8] sm:$0xff] %v303_v42 }
 0x213   :  { %306 = vst [vmem:[#allocation8 + $0x8] sm:$0xff] %v304_v44 }
 0x214   :  { %504 = shalt.err (!%p501_p0)
}
 0x215   :  { %s505_s12 = scalar_lea.hbm %s632_s5, 256 }
 0x216   :  { %p506_p1 = scmp.ne.s32.totalorder %s632_s5, %s505_s12  ;;  %p509_p2 = scmp.lt.u32.totalorder %s505_s12, %s632_s5 }
 0x218   :  { %p511_p3 = pnand %p509_p2, %p506_p1 }
 0x21a   :  { %514 = shalt.err (!%p511_p3)
}
 0x21b   :  { %318 = dma.vmem_to_hbm [thread:$0]  %s313_s9, 256, %s632_s5, [#allocation4], %s525_s1, %s525_s1, %s526_s17  }
 0x21c   :  { %519 = dma.done.wait [#allocation4], 256  }
 0x21d   :  { %520 = vsyncadd [#allocation4], 4294967040 }
 0x21e   :  { %322 = vsyncpa [#allocation3], 1 }
 0x21f   :  { %323 = vsyncpa [#allocation6], 1 }
 0x220   :  { %324 = vsyncpa [#allocation4], 1 }

// kernel: tpu_custom_call.1
= control target key start
LH: loop header
LB: loop body
LE: loop exit
PB: predicated region body
PF: predicated region fallthrough
CT: control target
= control target key end

     0   :  { %10 = vsyncpa [#allocation3], 0  ;;  %s627_s0 = inlined_call_operand.hbm [shape: f32[16,128], index: 0, kind: input, shape index: {}]   ;;  %s628_s1 = inlined_call_operand.hbm [shape: bf16[128,128], index: 1, kind: input, shape index: {}]   ;;  %s629_s2 = inlined_call_operand.vmem [shape: f32[1,128], index: 2, kind: input, shape index: {}]   ;;  %s630_s3 = inlined_call_operand.hbm [shape: bf16[128,128], index: 3, kind: input, shape index: {}]   ;;  %s631_s4 = inlined_call_operand.vmem [shape: f32[1,128], index: 4, kind: input, shape index: {}]   ;;  %s632_s5 = inlined_call_operand.hbm [shape: f32[16,128], index: 5, kind: output, shape index: {}]  }
   0x1   :  { %11 = vsyncpa [#allocation6], 0 }
   0x2   :  { %12 = vsyncpa [#allocation4], 0  ;;  %s521_s18 = smov [#allocation5]   ;;  %s427_s22 = scalar_lea.hbm %s628_s1, 1024 }
   0x3   :  { %s30_s19 = sshll.u32 %s521_s18, 4  ;;  %p428_p0 = scmp.ne.s32.totalorder %s628_s1, %s427_s22  ;;  %s31_s19 = int_to_ptr.vmem [resolvable:$true] %s30_s19 }
   0x4   :  { %p431_p1 = scmp.lt.u32.totalorder %s427_s22, %s628_s1 }
   0x6   :  { %p433_p2 = pnand %p431_p1, %p428_p0 }
   0x8   :  { %436 = shalt.err (!%p433_p2)
}
   0x9   :  { %s437_s27 = scalar_lea.vmem %s31_s19, 1024  ;;  %p442_p4 = scmp.lt.s32.totalorder %s31_s19, %s31_s19 }
   0xa   :  { %p438_p3 = scmp.ne.s32.totalorder %s31_s19, %s437_s27  ;;  %p443_p5 = scmp.lt.s32.totalorder %s437_s27, %s437_s27 }
   0xc   :  { %p444_p6 = por %p443_p5, %p442_p4 }
   0xe   :  { %p445_p7 = pnand %p444_p6, %p438_p3 }
  0x10   :  { %448 = shalt.err (!%p445_p7)
}
  0x11   :  { %s522_s28 = smov 64   ;;  %s523_s29 = smov 4  }
  0x12   :  { %36 = dma.hbm_to_vmem [thread:$0]  %s628_s1, 1024, %s31_s19, [#allocation6], %s522_s28, %s522_s28, %s523_s29  }
  0x13   :  { %s524_s7 = smov [#allocation2]   ;;  %s449_s11 = scalar_lea.hbm %s627_s0, 256 }
  0x14   :  { %s18_s8 = sshll.u32 %s524_s7, 4  ;;  %p450_p8 = scmp.ne.s32.totalorder %s627_s0, %s449_s11  ;;  %s19_s8 = int_to_ptr.vmem [resolvable:$true] %s18_s8 }
  0x15   :  { %p453_p9 = scmp.lt.u32.totalorder %s449_s11, %s627_s0 }
  0x17   :  { %p455_p10 = pnand %p453_p9, %p450_p8 }
  0x19   :  { %458 = shalt.err (!%p455_p10)
}
  0x1a   :  { %s459_s16 = scalar_lea.vmem %s19_s8, 256  ;;  %p464_p12 = scmp.lt.s32.totalorder %s19_s8, %s19_s8 }
  0x1b   :  { %p460_p11 = scmp.ne.s32.totalorder %s19_s8, %s459_s16  ;;  %p465_p13 = scmp.lt.s32.totalorder %s459_s16, %s459_s16 }
  0x1d   :  { %p466_p0 = por %p465_p13, %p464_p12 }
  0x1f   :  { %p467_p1 = pnand %p466_p0, %p460_p11 }
  0x21   :  { %470 = shalt.err (!%p467_p1)
}
  0x22   :  { %s525_s1 = smov 128   ;;  %s526_s17 = smov 8  }
  0x23   :  { %24 = dma.hbm_to_vmem [thread:$0]  %s627_s0, 256, %s19_s8, [#allocation3], %s525_s1, %s525_s1, %s526_s17  }
  0x24   :  { %s527_s20 = smov [#allocation7]   ;;  %s471_s24 = scalar_lea.hbm %s630_s3, 1024 }
  0x25   :  { %s44_s21 = sshll.u32 %s527_s20, 4  ;;  %p472_p2 = scmp.ne.s32.totalorder %s630_s3, %s471_s24  ;;  %s45_s21 = int_to_ptr.vmem [resolvable:$true] %s44_s21 }
  0x26   :  { %p475_p3 = scmp.lt.u32.totalorder %s471_s24, %s630_s3 }
  0x28   :  { %p477_p4 = pnand %p475_p3, %p472_p2 }
  0x2a   :  { %480 = shalt.err (!%p477_p4)
}
  0x2b   :  { %s481_s6 = scalar_lea.vmem %s45_s21, 1024  ;;  %p486_p6 = scmp.lt.s32.totalorder %s45_s21, %s45_s21 }
  0x2c   :  { %p482_p5 = scmp.ne.s32.totalorder %s45_s21, %s481_s6  ;;  %p487_p7 = scmp.lt.s32.totalorder %s481_s6, %s481_s6 }
  0x2e   :  { %p488_p8 = por %p487_p7, %p486_p6 }
  0x30   :  { %p489_p9 = pnand %p488_p8, %p482_p5 }
  0x32   :  { %492 = shalt.err (!%p489_p9)
}
  0x33   :  { %50 = dma.hbm_to_vmem [thread:$0]  %s630_s3, 1024, %s45_s21, [#allocation6], %s522_s28, %s522_s28, %s523_s29  }
  0x34   :  { %515 = dma.done.wait [#allocation3], 256  }
  0x35   :  { %516 = vsyncadd [#allocation3], 4294967040 }
  0x36   :  { %517 = dma.done.wait [#allocation6], 2048  }
  0x37   :  { %518 = vsyncadd [#allocation6], 4294965248  ;;  %v528_v0 = vmov 0.0   ;;  %vm529_vm0 = vmmov 0   ;;  %v411_v1 = vld [vmem:[#allocation5] sm:$0xff]   ;;  %v412_v2 = vld [vmem:[#allocation5 + $0x8] sm:$0xff]  }
  0x38   :  { %361 = vmatprep.subr.bf16.mxu0 %v528_v0  ;;  %377 = vmatprep.mubr.msk.bf16.mxu0 %vm529_vm0, %v528_v0  ;;  %v413_v3 = vld [vmem:[#allocation5 + $0x10] sm:$0xff]   ;;  %v419_v4 = vld [vmem:[#allocation7] sm:$0xff]   ;;  %v414_v5 = vld [vmem:[#allocation5 + $0x18] sm:$0xff]  }
  0x39   :  { %381 = vmatprep.subr.bf16.mxu1 %v528_v0  ;;  %397 = vmatprep.mubr.msk.bf16.mxu1 %vm529_vm0, %v528_v0  ;;  %v420_v6 = vld [vmem:[#allocation7 + $0x8] sm:$0xff]   ;;  %v415_v7 = vld [vmem:[#allocation5 + $0x20] sm:$0xff]   ;;  %v421_v8 = vld [vmem:[#allocation7 + $0x10] sm:$0xff]  }
  0x3a   :  { %362 = vmatpush3.bf16.msra.mxu0 %v411_v1  ;;  %382 = vmatpush3.bf16.msra.mxu1 %v419_v4  ;;  %v416_v9 = vld [vmem:[#allocation5 + $0x28] sm:$0xff]   ;;  %v422_v10 = vld [vmem:[#allocation7 + $0x18] sm:$0xff]   ;;  %v417_v11 = vld [vmem:[#allocation5 + $0x30] sm:$0xff]  }
  0x3b   :  { %363 = vmatprep.subr.bf16.mxu0 %v528_v0  ;;  %383 = vmatprep.subr.bf16.mxu1 %v528_v0  ;;  %v423_v12 = vld [vmem:[#allocation7 + $0x20] sm:$0xff]   ;;  %v418_v13 = vld [vmem:[#allocation5 + $0x38] sm:$0xff]   ;;  %v63_v14 = vld [vmem:[#allocation2] sm:$0xff] }
  0x3c   :  { %v64_v15 = vld [vmem:[#allocation2 + $0x8] sm:$0xff]  ;;  %v424_v16 = vld [vmem:[#allocation7 + $0x28] sm:$0xff]   ;;  %v425_v18 = vld [vmem:[#allocation7 + $0x30] sm:$0xff]  }
  0x3d   :  { %v65_v17 = vpack.c.bf16 %v64_v15, %v63_v14  ;;  %v426_v19 = vld [vmem:[#allocation7 + $0x38] sm:$0xff]   ;;  %v325_v20 = vld [vmem:[%s629_s2] ss:$0 sm:$0xff]  ;;  %s530_s2 = smov [#allocation8]  }
  0x3e   :  { %364 = vmatpush3.bf16.msra.mxu0 %v412_v2  ;;  %384 = vmatpush3.bf16.msra.mxu1 %v420_v6  ;;  %v334_v32 = vld [vmem:[%s631_s4] ss:$0 sm:$0xff]  ;;  %s312_s9 = sshll.u32 %s530_s2, 4  ;;  %s313_s9 = int_to_ptr.vmem [resolvable:$true] %s312_s9 }
  0x3f   :  { %365 = vmatprep.subr.bf16.mxu0 %v528_v0  ;;  %385 = vmatprep.subr.bf16.mxu1 %v528_v0  ;;  %s493_s4 = scalar_lea.vmem %s313_s9, 256  ;;  %p498_p11 = scmp.lt.s32.totalorder %s313_s9, %s313_s9 }
  0x40   :  { %p494_p10 = scmp.ne.s32.totalorder %s313_s9, %s493_s4  ;;  %p499_p12 = scmp.lt.s32.totalorder %s493_s4, %s493_s4 }
  0x42   :  { %366 = vmatpush3.bf16.msra.mxu0 %v413_v3  ;;  %386 = vmatpush3.bf16.msra.mxu1 %v421_v8  ;;  %p500_p13 = por %p499_p12, %p498_p11 }
  0x43   :  { %367 = vmatprep.subr.bf16.mxu0 %v528_v0  ;;  %387 = vmatprep.subr.bf16.mxu1 %v528_v0 }
  0x44   :  { %p501_p0 = pnand %p500_p13, %p494_p10 }
  0x46   :  { %368 = vmatpush3.bf16.msra.mxu0 %v414_v5  ;;  %388 = vmatpush3.bf16.msra.mxu1 %v422_v10 }
  0x47   :  { %369 = vmatprep.subr.bf16.mxu0 %v528_v0  ;;  %389 = vmatprep.subr.bf16.mxu1 %v528_v0 }
  0x4a   :  { %370 = vmatpush3.bf16.msra.mxu0 %v415_v7  ;;  %390 = vmatpush3.bf16.msra.mxu1 %v423_v12 }
  0x4b   :  { %371 = vmatprep.subr.bf16.mxu0 %v528_v0  ;;  %391 = vmatprep.subr.bf16.mxu1 %v528_v0 }
  0x4e   :  { %372 = vmatpush3.bf16.msra.mxu0 %v416_v9  ;;  %392 = vmatpush3.bf16.msra.mxu1 %v424_v16 }
  0x4f   :  { %373 = vmatprep.subr.bf16.mxu0 %v528_v0  ;;  %393 = vmatprep.subr.bf16.mxu1 %v528_v0 }
  0x52   :  { %374 = vmatpush3.bf16.msra.mxu0 %v417_v11  ;;  %394 = vmatpush3.bf16.msra.mxu1 %v425_v18 }
  0x53   :  { %375 = vmatprep.subr.bf16.mxu0 %v528_v0  ;;  %395 = vmatprep.subr.bf16.mxu1 %v528_v0 }
  0x56   :  { %376 = vmatpush3.bf16.msra.mxu0 %v418_v13  ;;  %396 = vmatpush3.bf16.msra.mxu1 %v426_v19 }
  0x59   :  { %378 = vmatmul.mubr.bf16.vlgmr.msra.gmra.mrb[0].mxu0 %v65_v17 }
 0x12c   :  { %v171_v21 = vpop.f32.mrb[0].mxu0 }
 0x12d   :  { %v172_v22 = vadd.f32 %v325_v20, %v171_v21  ;;  %v379_v23 = vpop.f32.mrb[1].mxu0 }
 0x12e   :  { %v174_v24 = vpop.f32.mrb[2].mxu0 }
 0x12f   :  { %v180_v25 = vmul.f32 0.01, %v172_v22  ;;  %v175_v26 = vadd.f32 %v325_v20, %v174_v24  ;;  %v380_v27 = vpop.f32.mrb[3].mxu0  ;;  %vm178_vm1 = vcmp.ge.f32.partialorder %v172_v22, 0.0 }
 0x131   :  { %vm179_vm2 = vcmp.ge.f32.partialorder %v175_v26, 0.0  ;;  %v181_v28 = vmul.f32 0.01, %v175_v26  ;;  %v182_v29 = vsel %vm178_vm1, %v172_v22, %v180_v25 }
 0x133   :  { %v183_v30 = vsel %vm179_vm2, %v175_v26, %v181_v28 }
 0x134   :  { %v184_v31 = vpack.c.bf16 %v183_v30, %v182_v29 }
 0x136   :  { %398 = vmatmul.mubr.bf16.vlgmr.msra.gmra.mrb[0].mxu1 %v184_v31 }
 0x209   :  { %v290_v33 = vpop.f32.mrb[0].mxu1 }
 0x20a   :  { %v291_v34 = vadd.f32 %v334_v32, %v290_v33  ;;  %v399_v35 = vpop.f32.mrb[1].mxu1 }
 0x20b   :  { %v293_v36 = vpop.f32.mrb[2].mxu1 }
 0x20c   :  { %vm297_vm3 = vcmp.ge.f32.partialorder %v291_v34, 0.0  ;;  %v299_v37 = vmul.f32 0.01, %v291_v34  ;;  %v294_v38 = vadd.f32 %v334_v32, %v293_v36  ;;  %v400_v39 = vpop.f32.mrb[3].mxu1 }
 0x20e   :  { %v301_v40 = vsel %vm297_vm3, %v291_v34, %v299_v37  ;;  %vm298_vm4 = vcmp.ge.f32.partialorder %v294_v38, 0.0  ;;  %v300_v41 = vmul.f32 0.01, %v294_v38 }
 0x20f   :  { %v303_v42 = vadd.f32 %v301_v40, %v63_v14 }
 0x210   :  { %v302_v43 = vsel %vm298_vm4, %v294_v38, %v300_v41 }
 0x211   :  { %v304_v44 = vadd.f32 %v302_v43, %v64_v15  ;;  %305 = vst [vmem:[#allocation8] sm:$0xff] %v303_v42 }
 0x213   :  { %306 = vst [vmem:[#allocation8 + $0x8] sm:$0xff] %v304_v44 }
 0x214   :  { %504 = shalt.err (!%p501_p0)
}
 0x215   :  { %s505_s12 = scalar_lea.hbm %s632_s5, 256 }
 0x216   :  { %p506_p1 = scmp.ne.s32.totalorder %s632_s5, %s505_s12  ;;  %p509_p2 = scmp.lt.u32.totalorder %s505_s12, %s632_s5 }
 0x218   :  { %p511_p3 = pnand %p509_p2, %p506_p1 }
 0x21a   :  { %514 = shalt.err (!%p511_p3)
}
 0x21b   :  { %318 = dma.vmem_to_hbm [thread:$0]  %s313_s9, 256, %s632_s5, [#allocation4], %s525_s1, %s525_s1, %s526_s17  }
 0x21c   :  { %519 = dma.done.wait [#allocation4], 256  }
 0x21d   :  { %520 = vsyncadd [#allocation4], 4294967040 }
 0x21e   :  { %322 = vsyncpa [#allocation3], 1 }
 0x21f   :  { %323 = vsyncpa [#allocation6], 1 }
 0x220   :  { %324 = vsyncpa [#allocation4], 1 }

</bundles_post_ra>
